<compile_context>
chip_gen: v6e
topology: v6e:2x2x1
jax: 0.10.0
libtpu: 0.0.40
codegen_flags: <defaults>
</compile_context>

<pallas_src>
import jax
import jax.numpy as jnp
from jax.experimental import pallas as pl
from jax.experimental.pallas import tpu as pltpu


def _cdiv(a, b):
    return -(-a // b)


def _round_up(x, m):
    return _cdiv(x, m) * m


def _vmem_tile_bytes(second_minor, minor, dtype):
    """Padded VMEM footprint of a (second_minor, minor) block."""
    it = jnp.dtype(dtype).itemsize
    sub = 8 * max(1, 4 // it)                 # 8 (f32) / 16 (bf16) / 32 (int8)
    return _round_up(second_minor, sub) * _round_up(minor, 128) * it


def _pick_block_g(G, L, itemsize, target_bytes):
    """Largest reduction block that divides G and satisfies Mosaic block rules
    for both feats (second-minor: %8==0 or ==G) and the lane-dense mask
    (minor: %128==0 or ==G).  Sized from the padded VMEM row footprint."""
    row_bytes = _round_up(L, 128) * itemsize
    want = max(1, target_bytes // row_bytes)
    if G <= want:
        return G                               # single step, full-extent block
    g = (min(want, G) // 128) * 128
    while g >= 128:
        if G % g == 0:
            return g
        g -= 128
    return None                                # caller pads (rare)


def pli_head_kernel(feats_ref, mask_ref, drug_ref, w2t_ref, w_drug_ref,
                    inv_cnt_ref, bias_ref, out_ref, acc_ref):
    """One (batch, g-tile) grid step.

    feats_ref : (1, block_g, L)  lane-dense SE(3) features (streamed)
    mask_ref  : (1, R, block_g)  0/1 residue mask, grouped (streamed)
    drug_ref  : (1, 1, Dd)       drug-GNN embedding (resident per batch)
    w2t_ref   : (R, L) f32       block-diagonal Linear weight, SE(3) half
    w_drug_ref: (1, Dd) f32      Linear weight, drug half
    inv_cnt_ref:(1, 1, 1) f32    1 / max(sum(mask), 1e-9)
    bias_ref  : (1, 1) f32 SMEM  Linear bias
    out_ref   : (1, 1, 1)        prediction
    acc_ref   : (R, L) f32       running  sum_g mask[r,g] * feats[g,l]
    """
    g = pl.program_id(1)

    @pl.when(g == 0)
    def _init():
        acc_ref[...] = jnp.zeros_like(acc_ref)

    # Entire per-tile reduction as one MXU matmul, native dtype in, f32 out.
    acc_ref[...] += jnp.dot(mask_ref[0], feats_ref[0],
                            preferred_element_type=jnp.float32)

    @pl.when(g == pl.num_programs(1) - 1)
    def _finalize():
        # <masked-mean(feats), w_se3>: contract accumulator with the
        # block-diagonal weight, then normalize by the valid-residue count.
        pooled = jnp.sum(acc_ref[...] * w2t_ref[...], keepdims=True)   # (1, 1)
        pooled = pooled * inv_cnt_ref[0]                               # (1, 1)
        drug_term = jnp.sum(drug_ref[0].astype(jnp.float32) * w_drug_ref[...],
                            keepdims=True)                             # (1, 1)
        result = pooled + drug_term + bias_ref[0, 0]
        out_ref[...] = jnp.reshape(result, (1, 1, 1)).astype(out_ref.dtype)


def se3_pli_head(feats, mask, drug_out, linear_w, linear_b,
                 *, target_tile_bytes=6 << 20):
    """Fused masked-mean-pool + concat + Linear(dim, 1) head.

    feats:    (B, N, D)  f32/bf16   SE(3) backbone degree-0 output
    mask:     (B, N)     bool/float residue validity (1 = valid)
    drug_out: (B, Dd)    f32/bf16   drug-GNN embedding
    linear_w: (1, D+Dd)  nn.Linear(dim, 1).weight
    linear_b: (1,)       nn.Linear(dim, 1).bias
    returns:  (B, 1) float32

    target_tile_bytes: feats bytes streamed per grid step.  6 MiB amortizes
    the ~0.35us/step overhead against v7x's 3.2 TB/s HBM while the
    double-buffered pipeline (<~14 MiB) still fits v5e/v6e; drop to 2-4 MiB on
    v5e if VMEM is tight elsewhere.
    """
    B, N, D = feats.shape
    Dd = drug_out.shape[1]
    assert linear_w.shape == (1, D + Dd)
    fdt = feats.dtype
    itemsize = jnp.dtype(fdt).itemsize

    # ---- lane-dense, copy-free regrouping of feats (the dominant HBM tensor)
    if D % 128 == 0:
        L, R, G = D, 1, N                     # already lane-dense
        feats_g = feats
    elif 128 % D == 0 and (N * D) % 128 == 0:
        L, R, G = 128, 128 // D, (N * D) // 128
        feats_g = feats.reshape(B, G, L)      # free reshape: row packs R residues
    else:
        # TODO(synk): lane-sparse fallback (block last dim = D < 128) — correct
        # but wastes VMEM lanes; upstream models should emit D with 128 % D == 0.
        L, R, G = D, 1, N
        feats_g = feats

    # ---- small operands ----------------------------------------------------
    mask_f = mask.astype(jnp.float32)                                   # (B, N)
    inv_cnt = 1.0 / jnp.maximum(jnp.sum(mask_f, axis=1), 1e-9)          # (B,)
    inv_cnt = inv_cnt.reshape(B, 1, 1).astype(jnp.float32)
    # 0/1 mask, grouped lane-dense as (B, R, G) in feats' dtype.  0/1 is exact
    # in bf16, so the streamed MXU operands stay in their native dtype; the
    # exact f32 1/count is applied only at finalize (so it is NOT folded into
    # the mask on purpose).
    mask_rg = jnp.transpose(mask_f.reshape(B, G, R), (0, 2, 1)).astype(fdt)

    # Block-diagonal Linear weight: w2t[r, l] = w_se3[l % D] iff l // D == r.
    w_se3 = linear_w[0, :D].astype(jnp.float32)                         # (D,)
    lane = jnp.arange(L)
    w2t = jnp.where((lane[None, :] // D) == jnp.arange(R)[:, None],
                    w_se3[lane % D][None, :], 0.0).astype(jnp.float32)  # (R, L)
    w_drug = linear_w[:, D:].astype(jnp.float32)                        # (1, Dd)
    bias = linear_b.reshape(1, 1).astype(jnp.float32)
    drug3 = drug_out.reshape(B, 1, Dd)

    # ---- reduction-axis tiling (no padding copy in the common case) -------
    block_g = _pick_block_g(G, L, itemsize, target_tile_bytes)
    if block_g is None:
        # Rare: G too large for one tile and no 128-aligned divisor.  Pad G
        # with zero-mask rows (one extra copy of feats; math stays exact).
        block_g = max(128, (target_tile_bytes
                            // (_round_up(L, 128) * itemsize)) // 128 * 128)
        Gp = _round_up(G, block_g)
        feats_g = jnp.pad(feats_g, ((0, 0), (0, Gp - G), (0, 0)))
        mask_rg = jnp.pad(mask_rg, ((0, 0), (0, 0), (0, Gp - G)))
        G = Gp
    n_g = G // block_g

    # ---- scoped-VMEM budget from the real (layout-padded) footprints ------
    streamed = (_vmem_tile_bytes(block_g, L, fdt)
                + _vmem_tile_bytes(R, block_g, fdt))
    resident = (_vmem_tile_bytes(1, Dd, drug_out.dtype)
                + _vmem_tile_bytes(R, L, jnp.float32)
                + _vmem_tile_bytes(1, Dd, jnp.float32)
                + 2 * _vmem_tile_bytes(1, 1, jnp.float32))
    need = (2 * (streamed + resident)                    # double-buffered
            + _vmem_tile_bytes(R, L, jnp.float32)        # accumulator scratch
            + (2 << 20))                                 # headroom
    vmem_limit = int(max(need, 8 << 20))

    grid = (B, n_g)
    grid_spec = pltpu.PrefetchScalarGridSpec(
        num_scalar_prefetch=0,
        grid=grid,
        in_specs=[
            # Streamed tiles — these carry all the HBM traffic.
            pl.BlockSpec((1, block_g, L), lambda b, g: (b, g, 0)),   # feats
            pl.BlockSpec((1, R, block_g), lambda b, g: (b, 0, g)),   # mask
            # Per-batch / global residents (revisited across the g axis).
            pl.BlockSpec((1, 1, Dd), lambda b, g: (b, 0, 0)),        # drug
            pl.BlockSpec((R, L), lambda b, g: (0, 0)),               # w2t
            pl.BlockSpec((1, Dd), lambda b, g: (0, 0)),              # w_drug
            pl.BlockSpec((1, 1, 1), lambda b, g: (b, 0, 0)),         # 1/count
            pl.BlockSpec(memory_space=pltpu.MemorySpace.SMEM),       # bias
        ],
        out_specs=pl.BlockSpec((1, 1, 1), lambda b, g: (b, 0, 0)),
        scratch_shapes=[pltpu.VMEM((R, L), jnp.float32)],
    )

    out = pl.pallas_call(
        pli_head_kernel,
        out_shape=jax.ShapeDtypeStruct((B, 1, 1), jnp.float32),
        grid_spec=grid_spec,
        compiler_params=pltpu.CompilerParams(
            dimension_semantics=("parallel", "arbitrary"),
            vmem_limit_bytes=vmem_limit),
    )(feats_g, mask_rg, drug3, w2t, w_drug, inv_cnt, bias)

    return out.reshape(B, 1)


if __name__ == "__main__":
    # Small shapes consistent with the module's forward:
    #   B=2 complexes, N=64 residues, D=32 SE(3) degree-0 dim, Dd=32 drug dim.
    B, N, D, Dd = 2, 64, 32, 32
    dim = D + Dd  # nn.Linear(dim, 1)

    key = jax.random.PRNGKey(0)
    k_feats, k_drug, k_w, k_b = jax.random.split(key, 4)

    # Stand-in for se3_model(...)['0'] output.
    feats = jax.random.normal(k_feats, (B, N, D), dtype=jnp.float32)
    # Boolean residue mask (as float32), with padding on the 2nd complex.
    lengths = jnp.array([N, N - 3], dtype=jnp.int32)
    mask = (jnp.arange(N)[None, :] < lengths[:, None]).astype(jnp.float32)
    # Stand-in for drug_model(Batch.from_data_list(...)) output.
    drug_out = jax.random.normal(k_drug, (B, Dd), dtype=jnp.float32)

    # nn.Linear(dim, 1) parameters, deterministic uniform(-1/sqrt(dim), +).
    bound = 1.0 / jnp.sqrt(jnp.float32(dim))
    linear_w = jax.random.uniform(k_w, (1, dim), minval=-bound, maxval=bound,
                                  dtype=jnp.float32)
    linear_b = jax.random.uniform(k_b, (1,), minval=-bound, maxval=bound,
                                  dtype=jnp.float32)

    preds = jax.block_until_ready(
        se3_pli_head(feats, mask, drug_out, linear_w, linear_b))

    # Plain-JAX reference of the same head (original cat + Linear formulation).
    # NOTE: like the PyTorch module, an all-zero mask row yields a huge finite
    # value (count clamped at 1e-9), not 0.
    pooled_ref = (feats * mask[:, :, None]).sum(1) / jnp.maximum(
        mask.sum(1, keepdims=True), 1e-9)
    ref = jnp.concatenate([pooled_ref, drug_out], axis=1) @ linear_w.T + linear_b

    assert preds.shape == (B, 1)
    assert jnp.allclose(preds, ref, atol=1e-4, rtol=1e-4), (preds, ref)

    print("KERNEL_OK")
</pallas_src>

<mosaic_0001>
module attributes {stable_mosaic.version = 11 : i64} {
  func.func @pli_head_kernel(%arg0: i32, %arg1: i32, %arg2: memref<1x16x128xf32, #tpu.memory_space<vmem>>, %arg3: memref<1x4x16xf32, #tpu.memory_space<vmem>>, %arg4: memref<1x1x32xf32, #tpu.memory_space<vmem>>, %arg5: memref<4x128xf32, #tpu.memory_space<vmem>>, %arg6: memref<1x32xf32, #tpu.memory_space<vmem>>, %arg7: memref<1x1x1xf32, #tpu.memory_space<vmem>>, %arg8: memref<1x1xf32, #tpu.memory_space<smem>>, %arg9: memref<1x1x1xf32, #tpu.memory_space<vmem>>, %arg10: memref<4x128xf32, #tpu.memory_space<vmem>>) attributes {dimension_semantics = [#tpu.dimension_semantics<parallel>, #tpu.dimension_semantics<arbitrary>], iteration_bounds = array<i64: 2, 1>, scalar_prefetch = 0 : i64, scratch_operands = 1 : i64, tpu.core_type = #tpu.core_type<tc>, window_params = [{transform_indices = @transform_0, window_bounds = array<i64: 1, 16, 128>}, {transform_indices = @transform_1, window_bounds = array<i64: 1, 4, 16>}, {transform_indices = @transform_2, window_bounds = array<i64: 1, 1, 32>}, {pipeline_mode = #tpu.pipeline_mode<synchronous>, transform_indices = @transform_3, window_bounds = array<i64: 4, 128>}, {pipeline_mode = #tpu.pipeline_mode<synchronous>, transform_indices = @transform_4, window_bounds = array<i64: 1, 32>}, {transform_indices = @transform_5, window_bounds = array<i64: 1, 1, 1>}, {transform_indices = @transform_6, window_bounds = array<i64: 1, 1>}, {transform_indices = @transform_7, window_bounds = array<i64: 1, 1, 1>}]} {
    %c0_i32 = arith.constant 0 : i32
    %0 = arith.cmpi eq, %arg1, %c0_i32 : i32
    %1 = arith.extui %0 : i1 to i32
    %c0_i32_0 = arith.constant 0 : i32
    %2 = arith.cmpi ne, %1, %c0_i32_0 : i32
    scf.if %2 {
      %cst_12 = arith.constant 0.000000e+00 : f32
      %14 = vector.broadcast %cst_12 : f32 to vector<4x128xf32>
      %c0_13 = arith.constant 0 : index
      %c0_14 = arith.constant 0 : index
      %15 = vector.load %arg10[%c0_13, %c0_14] : memref<4x128xf32, #tpu.memory_space<vmem>>, vector<4x128xf32>
      tpu.vector_store %arg10[%c0_13, %c0_14], %14 {strides = array<i32>} : memref<4x128xf32, #tpu.memory_space<vmem>>, vector<4x128xf32>,
    } else {
    }
    %c0 = arith.constant 0 : index
    %c0_1 = arith.constant 0 : index
    %3 = vector.load %arg10[%c0, %c0_1] : memref<4x128xf32, #tpu.memory_space<vmem>>, vector<4x128xf32>
    %c0_2 = arith.constant 0 : index
    %c0_3 = arith.constant 0 : index
    %c0_4 = arith.constant 0 : index
    %4 = vector.load %arg3[%c0_2, %c0_3, %c0_4] : memref<1x4x16xf32, #tpu.memory_space<vmem>>, vector<1x4x16xf32>
    %5 = vector.shape_cast %4 : vector<1x4x16xf32> to vector<4x16xf32>
    %c0_5 = arith.constant 0 : index
    %c0_6 = arith.constant 0 : index
    %c0_7 = arith.constant 0 : index
    %6 = vector.load %arg2[%c0_5, %c0_6, %c0_7] : memref<1x16x128xf32, #tpu.memory_space<vmem>>, vector<1x16x128xf32>
    %7 = vector.shape_cast %6 : vector<1x16x128xf32> to vector<16x128xf32>
    %cst = arith.constant dense<0.000000e+00> : vector<4x128xf32>
    %8 = tpu.matmul %5, %7, %cst {dimension_numbers = #tpu.dot_dimension_numbers<[1], [0], [0], [1], [0, 0, 1, 1], [], []>} : vector<4x16xf32>, vector<16x128xf32>, vector<4x128xf32> -> vector<4x128xf32>
    %9 = arith.addf %3, %8 : vector<4x128xf32>
    %c0_8 = arith.constant 0 : index
    %c0_9 = arith.constant 0 : index
    %10 = vector.load %arg10[%c0_8, %c0_9] : memref<4x128xf32, #tpu.memory_space<vmem>>, vector<4x128xf32>
    tpu.vector_store %arg10[%c0_8, %c0_9], %9 {strides = array<i32>} : memref<4x128xf32, #tpu.memory_space<vmem>>, vector<4x128xf32>,
    %c0_i32_10 = arith.constant 0 : i32
    %11 = arith.cmpi eq, %arg1, %c0_i32_10 : i32
    %12 = arith.extui %11 : i1 to i32
    %c0_i32_11 = arith.constant 0 : i32
    %13 = arith.cmpi ne, %12, %c0_i32_11 : i32
    scf.if %13 {
      %c0_12 = arith.constant 0 : index
      %c0_13 = arith.constant 0 : index
      %14 = vector.load %arg10[%c0_12, %c0_13] : memref<4x128xf32, #tpu.memory_space<vmem>>, vector<4x128xf32>
      %c0_14 = arith.constant 0 : index
      %c0_15 = arith.constant 0 : index
      %15 = vector.load %arg5[%c0_14, %c0_15] : memref<4x128xf32, #tpu.memory_space<vmem>>, vector<4x128xf32>
      %16 = arith.mulf %14, %15 : vector<4x128xf32>
      %17 = vector.shape_cast %16 : vector<4x128xf32> to vector<1x4x128xf32>
      %cst_16 = arith.constant dense<0.000000e+00> : vector<1xf32>
      %18 = vector.multi_reduction <add>, %17, %cst_16 [1, 2] : vector<1x4x128xf32> to vector<1xf32>
      %19 = vector.shape_cast %18 : vector<1xf32> to vector<1x1x1xf32>
      %20 = vector.extract %19[0, 0, 0] : f32 from vector<1x1x1xf32>
      %21 = vector.broadcast %20 : f32 to vector<1x1xf32>
      %c0_17 = arith.constant 0 : index
      %c0_18 = arith.constant 0 : index
      %c0_19 = arith.constant 0 : index
      %22 = vector.load %arg7[%c0_17, %c0_18, %c0_19] : memref<1x1x1xf32, #tpu.memory_space<vmem>>, vector<1x1x1xf32>
      %23 = vector.shape_cast %22 : vector<1x1x1xf32> to vector<1x1xf32>
      %24 = arith.mulf %21, %23 : vector<1x1xf32>
      %c0_20 = arith.constant 0 : index
      %c0_21 = arith.constant 0 : index
      %c0_22 = arith.constant 0 : index
      %25 = vector.load %arg4[%c0_20, %c0_21, %c0_22] : memref<1x1x32xf32, #tpu.memory_space<vmem>>, vector<1x1x32xf32>
      %26 = vector.shape_cast %25 : vector<1x1x32xf32> to vector<1x32xf32>
      %c0_23 = arith.constant 0 : index
      %c0_24 = arith.constant 0 : index
      %27 = vector.load %arg6[%c0_23, %c0_24] : memref<1x32xf32, #tpu.memory_space<vmem>>, vector<1x32xf32>
      %28 = arith.mulf %26, %27 : vector<1x32xf32>
      %29 = vector.shape_cast %28 : vector<1x32xf32> to vector<1x1x32xf32>
      %cst_25 = arith.constant dense<0.000000e+00> : vector<1xf32>
      %30 = vector.multi_reduction <add>, %29, %cst_25 [1, 2] : vector<1x1x32xf32> to vector<1xf32>
      %31 = vector.shape_cast %30 : vector<1xf32> to vector<1x1x1xf32>
      %32 = vector.extract %31[0, 0, 0] : f32 from vector<1x1x1xf32>
      %33 = vector.broadcast %32 : f32 to vector<1x1xf32>
      %34 = arith.addf %24, %33 : vector<1x1xf32>
      %c0_26 = arith.constant 0 : index
      %c0_27 = arith.constant 0 : index
      %35 = memref.load %arg8[%c0_26, %c0_27] : memref<1x1xf32, #tpu.memory_space<smem>>
      %36 = vector.broadcast %35 : f32 to vector<1x1xf32>
      %37 = arith.addf %34, %36 : vector<1x1xf32>
      %38 = vector.shape_cast %37 : vector<1x1xf32> to vector<1x1x1xf32>
      %c0_28 = arith.constant 0 : index
      %c0_29 = arith.constant 0 : index
      %c0_30 = arith.constant 0 : index
      %39 = vector.load %arg9[%c0_28, %c0_29, %c0_30] : memref<1x1x1xf32, #tpu.memory_space<vmem>>, vector<1x1x1xf32>
      tpu.vector_store %arg9[%c0_28, %c0_29, %c0_30], %38 {strides = array<i32>} : memref<1x1x1xf32, #tpu.memory_space<vmem>>, vector<1x1x1xf32>,
    } else {
    }
    return
  }
  func.func @transform_0(%arg0: i32, %arg1: i32) -> (i32, i32, i32) {
    %c0_i32 = arith.constant 0 : i32
    %c0_i32_0 = arith.constant 0 : i32
    return %arg0, %arg1, %c0_i32 : i32, i32, i32
  }
  func.func @transform_1(%arg0: i32, %arg1: i32) -> (i32, i32, i32) {
    %c0_i32 = arith.constant 0 : i32
    %c0_i32_0 = arith.constant 0 : i32
    return %arg0, %c0_i32, %arg1 : i32, i32, i32
  }
  func.func @transform_2(%arg0: i32, %arg1: i32) -> (i32, i32, i32) {
    %c0_i32 = arith.constant 0 : i32
    %c0_i32_0 = arith.constant 0 : i32
    %c0_i32_1 = arith.constant 0 : i32
    return %arg0, %c0_i32, %c0_i32_0 : i32, i32, i32
  }
  func.func @transform_3(%arg0: i32, %arg1: i32) -> (i32, i32) {
    %c0_i32 = arith.constant 0 : i32
    %c0_i32_0 = arith.constant 0 : i32
    %c0_i32_1 = arith.constant 0 : i32
    return %c0_i32, %c0_i32_0 : i32, i32
  }
  func.func @transform_4(%arg0: i32, %arg1: i32) -> (i32, i32) {
    %c0_i32 = arith.constant 0 : i32
    %c0_i32_0 = arith.constant 0 : i32
    %c0_i32_1 = arith.constant 0 : i32
    return %c0_i32, %c0_i32_0 : i32, i32
  }
  func.func @transform_5(%arg0: i32, %arg1: i32) -> (i32, i32, i32) {
    %c0_i32 = arith.constant 0 : i32
    %c0_i32_0 = arith.constant 0 : i32
    %c0_i32_1 = arith.constant 0 : i32
    return %arg0, %c0_i32, %c0_i32_0 : i32, i32, i32
  }
  func.func @transform_6(%arg0: i32, %arg1: i32) -> (i32, i32) {
    %c0_i32 = arith.constant 0 : i32
    %c0_i32_0 = arith.constant 0 : i32
    %c0_i32_1 = arith.constant 0 : i32
    return %c0_i32, %c0_i32_0 : i32, i32
  }
  func.func @transform_7(%arg0: i32, %arg1: i32) -> (i32, i32, i32) {
    %c0_i32 = arith.constant 0 : i32
    %c0_i32_0 = arith.constant 0 : i32
    %c0_i32_1 = arith.constant 0 : i32
    return %arg0, %c0_i32, %c0_i32_0 : i32, i32, i32
  }
}

</mosaic_0001>

<bundles_post_ra>
// kernel: tpu_custom_call.1
= control target key start
LH: loop header
LB: loop body
LE: loop exit
PB: predicated region body
PF: predicated region fallthrough
CT: control target
= control target key end

     0   :  { %s1015_s0 = inlined_call_operand.hbm [shape: f32[2,16,128], index: 0, kind: input, shape index: {}]   ;;  %s1016_s1 = inlined_call_operand.hbm [shape: f32[2,4,16], index: 1, kind: input, shape index: {}]   ;;  %s1017_s2 = inlined_call_operand.vmem [shape: f32[2,1,32], index: 2, kind: input, shape index: {}]   ;;  %s1018_s3 = inlined_call_operand.vmem [shape: f32[4,128], index: 3, kind: input, shape index: {}]   ;;  %s1019_s4 = inlined_call_operand.vmem [shape: f32[1,32], index: 4, kind: input, shape index: {}]   ;;  %s1020_s5 = inlined_call_operand.vmem [shape: f32[2,1,1], index: 5, kind: input, shape index: {}]   ;;  %s1021_s6 = inlined_call_operand.<no memory space> [shape: f32[1,1], index: 6, kind: input, shape index: {}]   ;;  %s1022_s7 = inlined_call_operand.vmem [shape: f32[2,1,1], index: 7, kind: output, shape index: {}]  }
   0x1   :  { %1023 = sst [smem:[#allocation10_spill]] %s1015_s0 }
   0x2   :  { %12 = sst [smem:[#allocation3]] %s1021_s6 }
   0x3   :  { %13 = vsyncpa [#allocation5], 0 }
   0x4   :  { %15 = vsyncpa [#allocation5 + $0x1], 0 }
   0x5   :  { %16 = vsyncpa [#allocation7], 0 }
   0x6   :  { %18 = vsyncpa [#allocation7 + $0x1], 0  ;;  %s874_s26 = smov 0   ;;  %s876_s27 = smov 0  }
   0x7   :  { %s878_s28 = smov 0   ;;  %s880_s29 = smov 0  }
   0x8   :  { %s882_s30 = smov 0   ;;  %s884_s8 = smov 0  }
   0x9 LB: > { %s619_s6 = sadd.s32 4294967295, %s823_s8   ;;  %s36_s9 = sadd.s32 1, %s819_s30  ;;  %s823_s8 = sphi %s884_s8, %s24_s8   ;;  %s819_s30 = sphi %s882_s30, %s1033_s30   ;;  %s815_s29 = sphi %s880_s29, %s1032_s29   ;;  %s811_s28 = sphi %s878_s28, %s1031_s28   ;;  %s807_s27 = sphi %s876_s27, %s1030_s27   ;;  %s803_s26 = sphi %s874_s26, %s1029_s26  }
   0xa   : > { %p38_p0 = scmp.ge.s32.totalorder %s36_s9, 2  ;;  %s45_s10 = sadd.s32 1, %s811_s28 }
   0xb   : > { %p52_p1 = scmp.ne.s32.totalorder %s811_s28, %s807_s27  ;;  %p53_p2 = scmp.eq.s32.totalorder %s823_s8, 0 }
   0xc   : > { %s1035_s9 = smov (%p38_p0, %s36_s9), 0  ;;  %p58_p4 = scmp.ne.s32.totalorder %s807_s27, %s803_s26 }
   0xd   : > { %p910_p3 = por %p53_p2, %p52_p1  ;;  %s40_s12 = ssub.s32 %s819_s30, %s1035_s9 }
   0xe   : > { %p59_p5 = scmp.eq.s32.totalorder %s619_s6, 0  ;;  %p43_p6 = scmp.eq.s32.totalorder %s40_s12, 0 }
   0xf   : > { %p660_p8 = scmp.lt.s32.totalorder %s823_s8, 2  ;;  %s926_s15 = sand.u32 1, %s811_s28  }
  0x10   : > { %p917_p7 = por %p59_p5, %p58_p4  ;;  %s634_s16 = sshll.u32 %s819_s30, 8 }
  0x11   : > { %s923_s14 = scalar_select %p43_p6, %s811_s28, %s45_s10  }
  0x12   : > { %s623_s17 = sshll.u32 %s926_s15, 4  ;;  %s1026_s0 = sld [smem:[#allocation10_spill]] }
  0x13   : > { %s264_s21 = scalar_lea.vmem [#allocation4], %s623_s17  ;;  %p935_p9 = pnand %p660_p8, %p910_p3 }
  0x14   : > { %s273_s22 = sshll.u32 %s264_s21, 4  ;;  %s261_s24 = scalar_lea.sflag [#allocation5], %s926_s15  ;;  %s274_s22 = int_to_ptr.vmem [resolvable:$true] %s273_s22 }
  0x15   : > { %p715_p10 = pneg %p935_p9  ;;  %s726_s25 = scalar_lea.vmem %s274_s22, 256 }
  0x16   : > { %p727_p11 = scmp.ne.s32.totalorder %s274_s22, %s726_s25  ;;  %s825_s26 = smov [#allocation4]  }
  0x17   : > { %s731_s6 = sshll.u32 %s825_s26, 4  ;;  %s732_s6 = int_to_ptr.vmem [resolvable:$false] %s731_s6 }
  0x18   : > { %s272_s20 = scalar_lea.hbm %s1026_s0, %s634_s16  ;;  %p729_p12 = pnand %p727_p11, %p715_p10 }
  0x19   : > { %s733_s10 = scalar_lea.vmem %s732_s6, 512  ;;  %p734_p0 = scmp.lt.s32.totalorder %s274_s22, %s732_s6 }
  0x1a   : > { %p730_p13 = pneg %p729_p12  ;;  %p735_p1 = scmp.lt.s32.totalorder %s733_s10, %s726_s25 }
  0x1c   : > { %p736_p2 = por %p735_p1, %p734_p0 }
  0x1e   : > { %p737_p3 = pnand %p736_p2, %p730_p13 }
  0x20   : > { %740 = shalt.err (!%p737_p3)
}
  0x21   : > { %s826_s11 = smov 128   ;;  %s827_s12 = smov 8  }
  0x22   : > { %656 = dma.hbm_to_vmem [thread:$0]  (!%p935_p9), %s272_s20, 256, %s274_s22, %s261_s24, %s826_s11, %s826_s11, %s827_s12  }
  0x23   : > { %p628_p4 = scmp.ge.s32.totalorder %s823_s8, 1  ;;  %p312_p5 = scmp.lt.s32.totalorder %s823_s8, 3 }
  0x24   : > { %s626_s16 = sshll.u32 %s926_s15, 2  ;;  %s627_s18 = sshll.u32 %s819_s30, 6 }
  0x25   : > { %p950_p6 = pnand %p628_p4, %p312_p5  ;;  %s287_s19 = scalar_lea.vmem [#allocation6], %s626_s16 }
  0x26   : > { %s295_s21 = sshll.u32 %s287_s19, 4  ;;  %s293_s6 = scalar_lea.hbm %s1016_s1, %s627_s18  ;;  %s296_s21 = int_to_ptr.vmem [resolvable:$true] %s295_s21 }
  0x27   : > { %s284_s10 = scalar_lea.sflag [#allocation7], %s926_s15  ;;  %s754_s0 = scalar_lea.vmem %s296_s21, 64 }
  0x28   : > { %p755_p8 = scmp.ne.s32.totalorder %s296_s21, %s754_s0  ;;  %s828_s20 = smov [#allocation6]  }
  0x29   : > { %s759_s22 = sshll.u32 %s828_s20, 4  ;;  %s760_s22 = int_to_ptr.vmem [resolvable:$false] %s759_s22 }
  0x2a   : > { %p757_p11 = pnand %p755_p8, %p715_p10  ;;  %s761_s24 = scalar_lea.vmem %s760_s22, 128 }
  0x2b   : > { %p762_p13 = scmp.lt.s32.totalorder %s296_s21, %s760_s22  ;;  %p763_p0 = scmp.lt.s32.totalorder %s761_s24, %s754_s0 }
  0x2c   : > { %p758_p12 = pneg %p757_p11 }
  0x2d   : > { %p764_p1 = por %p763_p0, %p762_p13 }
  0x2f   : > { %p765_p2 = pnand %p764_p1, %p758_p12 }
  0x31   : > { %768 = shalt.err (!%p765_p2)
}
  0x32   : > { %659 = dma.hbm_to_vmem [thread:$0]  (!%p935_p9), %s293_s6, 64, %s296_s21, %s284_s10  }
  0x33   : > { %316 = sbr.rel (%p950_p6) target bundleno = 481 (0x1e1), region = 48  ;;  %s318_s15 = sand.u32 (!%p950_p6), 1, %s807_s27  }
  0x34   : > { %s629_s11 = sshll.u32 (!%p950_p6), %s318_s15, 4  ;;  %s319_s12 = scalar_lea.sflag (!%p950_p6), [#allocation5], %s318_s15 }
  0x35   : > { %s322_s16 = scalar_lea.vmem (!%p950_p6), [#allocation4], %s629_s11 }
  0x38   : > { %794 = dma.done.wait (%p917_p7), %s319_s12, 256  }
  0x39   : > { %796 = vsyncadd (%p917_p7), %s319_s12, 4294967040  ;;  %s630_s0 = sshll.u32 %s318_s15, 2  ;;  %s328_s18 = scalar_lea.sflag [#allocation7], %s318_s15 }
  0x3a   : > { %s331_s19 = scalar_lea.vmem [#allocation6], %s630_s0 }
  0x3b   : > { %798 = dma.done.wait (%p917_p7), %s328_s18, 64  }
  0x3c   : > { %800 = vsyncadd (%p917_p7), %s328_s18, 4294967232  ;;  %v829_v0 = vmov 0.0   ;;  %vm830_vm0 = vmmov 0   ;;  %v389_v1 = vld [vmem:[%s322_s16 + $0x8] sm:$0xff]  ;;  %v388_v2 = vld [vmem:[%s322_s16] sm:$0xff]  ;;  %vm390_vm1 = vcmask 130048  }
  0x3d   : > { %385 = vst [vmem:[#allocation2] sm:$0xf] %v829_v0  ;;  %638 = vmatprep.subr.mxu0 %v829_v0  ;;  %642 = vmatprep.mubr.msk.f32.mxu0 %vm830_vm0, %v829_v0  ;;  %v387_v3 = vld [vmem:[%s331_s19] sm:$0xf]  ;;  %p372_p9 = scmp.lt.s32.totalorder %s815_s29, 1  ;;  %vm472_vm2 = vcmask 1043456  }
  0x3e   : > { %639 = vmatpush3.msra.mxu0 %v389_v1  ;;  %v470_v8 = vld [vmem:[%s1018_s3] sm:$0xf]  ;;  %vm489_vm3 = vcmask 253952   ;;  %s502_s10 = sld [smem:[#allocation3]]  ;;  %vm505_vm4 = vcmask 0  }
  0x3f   : > { %640 = vmatprep.subr.mxu0 %v829_v0  ;;  %s1037_s29 = smov (!%p372_p9, %s815_s29), 1  ;;  %v487_v10 = vld [vmem:[%s1019_s4] sm:$0x1] }
  0x40   : > { %641 = vmatpush3.msra.mxu0 %v388_v2  ;;  %s374_s17 = scalar_lea.vmem %s1017_s2, %s1037_s29  ;;  %s377_s24 = scalar_lea.vmem %s1020_s5, %s1037_s29 }
  0x41   : > { %643 = vmatmul.mubr.msk.f32.vlgmr.msra.gmra.mxu0 %vm390_vm1, %v387_v3  ;;  %v486_v9 = vld [vmem:[%s374_s17] sm:$0x1]  ;;  %s380_s0 = scalar_lea.vmem %s1022_s7, %s1037_s29 }
  0x42   : > { %v488_v13 = vmul.f32 %v487_v10, %v486_v9  ;;  %v484_v31 = vld [vmem:[%s377_s24] sm:$0x1] }
  0x44   : > { %v386_v4 = vld [vmem:[#allocation2] sm:$0xf]  ;;  %v490_v15 = vsel %vm489_vm3, %v488_v13, 0.0  ;;  %v503_v34 = vstv %s502_s10 }
 0x101   : > { %v460_v5 = vpop.f32.mrf.mxu0 }
 0x102   : > { %v464_v6 = vadd.f32 %v460_v5, %v386_v4 }
 0x103   : > { %v644_v7 = vpop.f32.mrf.mxu0 }
 0x104   : > { %465 = vst [vmem:[#allocation2] sm:$0xf] %v464_v6 }
 0x10b   : > { %v469_v11 = vld [vmem:[#allocation2] sm:$0xf] }
 0x10c   : > { %v471_v12 = vmul.f32 %v470_v8, %v469_v11 }
 0x10e   : > { %v473_v14 = vsel %vm472_vm2, %v471_v12, 0.0 }
 0x10f   : > { %474 = vadd.xlane.f32.xlu0 %v473_v14 }
 0x113   : > { %491 = vadd.xlane.f32.xlu0 %v490_v15 }
 0x198   : > { %v475_v16 = vpop.xlane.xlu0 %474 }
 0x199   : > { %v476_v17 = vrot.slane %v475_v16, 4 }
 0x19b   : > { %v477_v18 = vadd.f32 %v476_v17, %v475_v16 }
 0x19c   : > { %v492_v19 = vpop.xlane.xlu0 %491 }
 0x19d   : > { %v478_v20 = vrot.slane %v477_v18, 2  ;;  %v493_v21 = vrot.slane %v492_v19, 4 }
 0x19f   : > { %v494_v22 = vadd.f32 %v493_v21, %v492_v19  ;;  %v479_v23 = vadd.f32 %v478_v20, %v477_v18 }
 0x1a1   : > { %v495_v24 = vrot.slane %v494_v22, 2  ;;  %v480_v25 = vrot.slane %v479_v23, 1 }
 0x1a3   : > { %v496_v26 = vadd.f32 %v495_v24, %v494_v22  ;;  %v481_v27 = vadd.f32 %v480_v25, %v479_v23 }
 0x1a5   : > { %645 = vpush %v481_v27  ;;  %v497_v28 = vrot.slane %v496_v26, 1 }
 0x1a7   : > { %v498_v29 = vadd.f32 %v497_v28, %v496_v26 }
 0x1a9   : > { %647 = vpush %v498_v29 }
 0x1d6   : > { %s646_s15 = spop %645 }
 0x1d7   : > { %v483_v30 = vstv %s646_s15 }
 0x1d8   : > { %v485_v32 = vmul.f32 %v484_v31, %v483_v30 }
 0x1da   : > { %s648_s11 = spop %647 }
 0x1db   : > { %v500_v33 = vstv %s648_s11 }
 0x1dc   : > { %v501_v35 = vadd.f32 %v500_v33, %v485_v32 }
 0x1de   : > { %v504_v36 = vadd.f32 %v503_v34, %v501_v35 }
 0x1e0   : > { %506 = vst.msk [vmem:[%s380_s0] sm:$0x1] %vm505_vm4, %v504_v36 }
 0x1e1 PF: > { %s24_s8 = sadd.s32 1, %s823_s8   ;;  %s1029_s26 = smov %s807_s27 }
 0x1e2   : > { %p21_p7 = scmp.ge.s32.totalorder %s24_s8, 4   ;;  %s1030_s27 = smov %s811_s28 }
 0x1e3   : > { %s1031_s28 = smov %s923_s14  ;;  %s1032_s29 = smov %s819_s30 }
 0x1e4   : > { %s1033_s30 = smov %s1035_s9  ;;  %23 = sbr.rel (!%p21_p7) target bundleno = 9 (0x9), region = 115 }
 0x1e9   :  { %524 = vsyncpa [#allocation5], 1 }
 0x1ea   :  { %526 = vsyncpa [#allocation5 + $0x1], 1 }
 0x1eb   :  { %527 = vsyncpa [#allocation7], 1 }
 0x1ec   :  { %529 = vsyncpa [#allocation7 + $0x1], 1 }

</bundles_post_ra>
